<compile_context>
chip_gen: v6e
topology: v6e:2x2x1
jax: 0.10.0
libtpu: 0.0.40
codegen_flags: <defaults>
</compile_context>

<pallas_src>
import functools

import jax
import jax.numpy as jnp
from jax.experimental import pallas as pl
from jax.experimental.pallas import tpu as pltpu


def _pooler_kernel(x_ref, w_ref, b_ref, o_ref, *, mxu_dtype):
    # x_ref: (TB, K)  first-token activations for this batch tile
    # w_ref: (K, TN)  (in, out)-layout weight columns, already in mxu_dtype
    # b_ref: (1, TN)  f32 bias slice
    x = x_ref[...]
    if x.dtype != jnp.dtype(mxu_dtype):
        # Only taken on the direct-slice path (activations arrive in their
        # original dtype); tiny (TB, K) VPU cast.
        x = x.astype(mxu_dtype)
    y = jnp.dot(x, w_ref[...], preferred_element_type=jnp.float32)  # (TB, TN) f32
    y = y + b_ref[...]                                              # f32 bias add
    o_ref[...] = jnp.tanh(y).astype(o_ref.dtype)


def bert_pooler(hidden_states, weight, bias, *, block_b=256, block_n=512,
                mxu_dtype=jnp.bfloat16, out_dtype=None):
    """hidden_states: (B, S, H); weight: (H, H) torch (out, in); bias: (H,)."""
    B, S, H = hidden_states.shape
    if out_dtype is None:
        out_dtype = hidden_states.dtype

    # ---- Batch tiling: minimize padding (round_up(cdiv(B, num_b), 8)). ----
    num_b = pl.cdiv(B, block_b)
    TB = ((pl.cdiv(B, num_b) + 7) // 8) * 8
    num_b = pl.cdiv(B, TB)
    B_pad = num_b * TB

    # ---- Output-feature (N) tiling: lane-aligned, minimal padding. ----
    num_n = pl.cdiv(H, block_n)
    TN = ((pl.cdiv(H, num_n) + 127) // 128) * 128
    num_n = pl.cdiv(H, TN)
    N_total = num_n * TN

    # ---- Activations: fuse the first-token slice into the BlockSpec when
    #      H is lane-aligned; otherwise stage a half-size bf16 slab. ----
    if H % 128 == 0:
        K = H
        # (B, S, H) -> (B, S*H): free metadata reshape; block (TB, H) at
        # column-block 0 reads exactly token 0 of each row straight from HBM.
        x_in = hidden_states.reshape(B, S * H)
    else:
        K = ((H + 127) // 128) * 128
        first = hidden_states[:, 0, :].astype(mxu_dtype)       # (B, H) slice+cast
        x_in = jnp.pad(first, ((0, B_pad - B), (0, K - H)))    # fused pad
    x_spec = pl.BlockSpec((TB, K), lambda j, i: (i, 0))

    # ---- Weight/bias prep (once, in the wrapper): transpose to (K, N),
    #      cast to MXU dtype, pad to lane multiples. ----
    w_p = jnp.pad(weight.T.astype(mxu_dtype), ((0, K - H), (0, N_total - H)))
    b_p = jnp.pad(bias.astype(jnp.float32), ((0, N_total - H),)).reshape(1, N_total)

    if num_n == 1:
        # Block index is constant -> never re-fetched: single-buffer to halve
        # the resident weight's VMEM footprint.
        w_spec = pl.BlockSpec((K, TN), lambda j, i: (0, j),
                              pipeline_mode=pl.Buffered(1))
        b_spec = pl.BlockSpec((1, TN), lambda j, i: (0, j),
                              pipeline_mode=pl.Buffered(1))
    else:
        # Weight columns stream across the outer grid axis: keep default
        # double-buffering so their DMA overlaps the MXU.
        w_spec = pl.BlockSpec((K, TN), lambda j, i: (0, j))
        b_spec = pl.BlockSpec((1, TN), lambda j, i: (0, j))

    out = pl.pallas_call(
        functools.partial(_pooler_kernel, mxu_dtype=mxu_dtype),
        out_shape=jax.ShapeDtypeStruct((B_pad, N_total), out_dtype),
        grid_spec=pltpu.PrefetchScalarGridSpec(
            num_scalar_prefetch=0,
            # N outer, batch inner: a weight-column block stays resident in
            # VMEM across all batch tiles; on v7x the parallel N axis gives
            # each TensorCore disjoint weight columns (weight read once).
            grid=(num_n, num_b),
            in_specs=[x_spec, w_spec, b_spec],
            out_specs=pl.BlockSpec((TB, TN), lambda j, i: (i, j)),
        ),
        compiler_params=pltpu.CompilerParams(
            dimension_semantics=("parallel", "parallel")),
    )(x_in, w_p, b_p)

    return out[:B, :H]


if __name__ == "__main__":
    key = jax.random.PRNGKey(0)
    k1, k2, k3, k4, k5, k6 = jax.random.split(key, 6)

    # Case 1: small, lane-unaligned hidden size (staged first-token path).
    B, S, H = 2, 8, 32
    hidden_states = jax.random.normal(k1, (B, S, H), dtype=jnp.float32)
    weight = jax.random.normal(k2, (H, H), dtype=jnp.float32) * 0.02  # (out, in)
    bias = jax.random.normal(k3, (H,), dtype=jnp.float32) * 0.02

    out = jax.block_until_ready(bert_pooler(hidden_states, weight, bias))
    ref = jnp.tanh(hidden_states[:, 0] @ weight.T + bias)
    assert out.shape == (B, H)
    assert jnp.allclose(out, ref, atol=2e-2, rtol=2e-2)

    # Case 2: lane-aligned hidden size (first-token slice fused into BlockSpec).
    B2, S2, H2 = 8, 4, 128
    hs2 = jax.random.normal(k4, (B2, S2, H2), dtype=jnp.float32)
    w2 = jax.random.normal(k5, (H2, H2), dtype=jnp.float32) * 0.02
    b2 = jax.random.normal(k6, (H2,), dtype=jnp.float32) * 0.02

    out2 = jax.block_until_ready(bert_pooler(hs2, w2, b2))
    ref2 = jnp.tanh(hs2[:, 0] @ w2.T + b2)
    assert out2.shape == (B2, H2)
    assert jnp.allclose(out2, ref2, atol=2e-2, rtol=2e-2)

    print("KERNEL_OK")
</pallas_src>

<mosaic_0001>
module attributes {stable_mosaic.version = 11 : i64} {
  func.func @_pooler_kernel(%arg0: i32, %arg1: i32, %arg2: memref<8x128xbf16, #tpu.memory_space<vmem>>, %arg3: memref<128x128xbf16, #tpu.memory_space<vmem>>, %arg4: memref<1x128xf32, #tpu.memory_space<vmem>>, %arg5: memref<8x128xf32, #tpu.memory_space<vmem>>) attributes {dimension_semantics = [#tpu.dimension_semantics<parallel>, #tpu.dimension_semantics<parallel>], iteration_bounds = array<i64: 1, 1>, scalar_prefetch = 0 : i64, scratch_operands = 0 : i64, tpu.core_type = #tpu.core_type<tc>, window_params = [{transform_indices = @transform_0, window_bounds = array<i64: 8, 128>}, {pipeline_mode = #tpu.pipeline_mode<synchronous>, transform_indices = @transform_1, window_bounds = array<i64: 128, 128>}, {pipeline_mode = #tpu.pipeline_mode<synchronous>, transform_indices = @transform_2, window_bounds = array<i64: 1, 128>}, {transform_indices = @transform_3, window_bounds = array<i64: 8, 128>}]} {
    %c0 = arith.constant 0 : index
    %c0_0 = arith.constant 0 : index
    %0 = vector.load %arg2[%c0, %c0_0] : memref<8x128xbf16, #tpu.memory_space<vmem>>, vector<8x128xbf16>
    %c0_1 = arith.constant 0 : index
    %c0_2 = arith.constant 0 : index
    %1 = vector.load %arg3[%c0_1, %c0_2] : memref<128x128xbf16, #tpu.memory_space<vmem>>, vector<128x128xbf16>
    %cst = arith.constant dense<0.000000e+00> : vector<8x128xf32>
    %2 = tpu.matmul %0, %1, %cst {dimension_numbers = #tpu.dot_dimension_numbers<[1], [0], [0], [1], [0, 0, 1, 1], [], []>} : vector<8x128xbf16>, vector<128x128xbf16>, vector<8x128xf32> -> vector<8x128xf32>
    %c0_3 = arith.constant 0 : index
    %c0_4 = arith.constant 0 : index
    %3 = vector.load %arg4[%c0_3, %c0_4] : memref<1x128xf32, #tpu.memory_space<vmem>>, vector<1x128xf32>
    %4 = vector.broadcast %3 : vector<1x128xf32> to vector<8x128xf32>
    %5 = arith.addf %2, %4 : vector<8x128xf32>
    %6 = math.tanh %5 : vector<8x128xf32>
    %c0_5 = arith.constant 0 : index
    %c0_6 = arith.constant 0 : index
    %7 = vector.load %arg5[%c0_5, %c0_6] : memref<8x128xf32, #tpu.memory_space<vmem>>, vector<8x128xf32>
    tpu.vector_store %arg5[%c0_5, %c0_6], %6 {strides = array<i32>} : memref<8x128xf32, #tpu.memory_space<vmem>>, vector<8x128xf32>,
    return
  }
  func.func @transform_0(%arg0: i32, %arg1: i32) -> (i32, i32) {
    %c0_i32 = arith.constant 0 : i32
    %c0_i32_0 = arith.constant 0 : i32
    return %arg1, %c0_i32 : i32, i32
  }
  func.func @transform_1(%arg0: i32, %arg1: i32) -> (i32, i32) {
    %c0_i32 = arith.constant 0 : i32
    %c0_i32_0 = arith.constant 0 : i32
    return %c0_i32, %arg0 : i32, i32
  }
  func.func @transform_2(%arg0: i32, %arg1: i32) -> (i32, i32) {
    %c0_i32 = arith.constant 0 : i32
    %c0_i32_0 = arith.constant 0 : i32
    return %c0_i32, %arg0 : i32, i32
  }
  func.func @transform_3(%arg0: i32, %arg1: i32) -> (i32, i32) {
    %c0_i32 = arith.constant 0 : i32
    return %arg1, %arg0 : i32, i32
  }
}

</mosaic_0001>

<bundles_post_ra>
// kernel: tpu_custom_call.1
= control target key start
LH: loop header
LB: loop body
LE: loop exit
PB: predicated region body
PF: predicated region fallthrough
CT: control target
= control target key end

     0   :  { %8 = vsyncpa [#allocation3], 0  ;;  %s332_s0 = inlined_call_operand.hbm [shape: bf16[8,128], index: 0, kind: input, shape index: {}]   ;;  %s333_s1 = inlined_call_operand.hbm [shape: bf16[128,128], index: 1, kind: input, shape index: {}]   ;;  %s334_s2 = inlined_call_operand.vmem [shape: f32[1,128], index: 2, kind: input, shape index: {}]   ;;  %s335_s3 = inlined_call_operand.hbm [shape: f32[8,128], index: 3, kind: output, shape index: {}]  }
   0x1   :  { %9 = vsyncpa [#allocation6], 0 }
   0x2   :  { %10 = vsyncpa [#allocation4], 0  ;;  %s293_s12 = smov [#allocation2]   ;;  %s294_s14 = smov [#allocation5]  }
   0x3   :  { %s17_s13 = sshll.u32 %s293_s12, 4  ;;  %s26_s15 = sshll.u32 %s294_s14, 4  ;;  %s18_s13 = int_to_ptr.vmem [resolvable:$true] %s17_s13  ;;  %s27_s15 = int_to_ptr.vmem [resolvable:$true] %s26_s15 }
   0x4   :  { %s235_s16 = scalar_lea.vmem %s18_s13, 64  ;;  %p240_p1 = scmp.lt.s32.totalorder %s18_s13, %s18_s13 }
   0x5   :  { %p236_p0 = scmp.ne.s32.totalorder %s18_s13, %s235_s16  ;;  %p241_p2 = scmp.lt.s32.totalorder %s235_s16, %s235_s16 }
   0x7   :  { %p242_p3 = por %p241_p2, %p240_p1 }
   0x9   :  { %p243_p4 = pnand %p242_p3, %p236_p0 }
   0xb   :  { %246 = shalt.err (!%p243_p4)
}
   0xc   :  { %20 = dma.hbm_to_vmem [thread:$0]  %s332_s0, 64, %s18_s13, [#allocation3]  }
   0xd   :  { %s255_s19 = scalar_lea.vmem %s27_s15, 1024  ;;  %p260_p6 = scmp.lt.s32.totalorder %s27_s15, %s27_s15 }
   0xe   :  { %p256_p5 = scmp.ne.s32.totalorder %s27_s15, %s255_s19  ;;  %p261_p7 = scmp.lt.s32.totalorder %s255_s19, %s255_s19 }
  0x10   :  { %p262_p8 = por %p261_p7, %p260_p6 }
  0x12   :  { %p263_p9 = pnand %p262_p8, %p256_p5 }
  0x14   :  { %266 = shalt.err (!%p263_p9)
}
  0x15   :  { %s295_s20 = smov 64   ;;  %s296_s21 = smov 4  }
  0x16   :  { %32 = dma.hbm_to_vmem [thread:$0]  %s333_s1, 1024, %s27_s15, [#allocation6], %s295_s20, %s295_s20, %s296_s21  }
  0x17   :  { %287 = dma.done.wait [#allocation3], 64  }
  0x18   :  { %288 = vsyncadd [#allocation3], 4294967232 }
  0x19   :  { %289 = dma.done.wait [#allocation6], 1024  }
  0x1a   :  { %290 = vsyncadd [#allocation6], 4294966272  ;;  %v297_v0 = vmov 0.0   ;;  %vm298_vm0 = vmmov 0   ;;  %v217_v1 = vld [vmem:[#allocation5 + $0x38] sm:$0xff]   ;;  %v218_v2 = vld [vmem:[#allocation5 + $0x30] sm:$0xff]  }
  0x1b   :  { %190 = vmatprep.subr.bf16.mxu0 %v297_v0  ;;  %206 = vmatprep.mubr.msk.bf16.mxu0 %vm298_vm0, %v297_v0  ;;  %v219_v3 = vld [vmem:[#allocation5 + $0x28] sm:$0xff]   ;;  %v220_v4 = vld [vmem:[#allocation5 + $0x20] sm:$0xff]   ;;  %v221_v5 = vld [vmem:[#allocation5 + $0x18] sm:$0xff]   ;;  %s299_s24 = smov [#allocation7]  }
  0x1c   :  { %191 = vmatpush3.bf16.msra.mxu0 %v217_v1  ;;  %v222_v6 = vld [vmem:[#allocation5 + $0x10] sm:$0xff]   ;;  %v223_v7 = vld [vmem:[#allocation5 + $0x8] sm:$0xff]   ;;  %v224_v8 = vld [vmem:[#allocation5] sm:$0xff]   ;;  %s162_s25 = sshll.u32 %s299_s24, 4  ;;  %s163_s25 = int_to_ptr.vmem [resolvable:$true] %s162_s25 }
  0x1d   :  { %192 = vmatprep.subr.bf16.mxu0 %v297_v0  ;;  %v42_v9 = vld [vmem:[#allocation2] sm:$0xf]  ;;  %s267_s26 = scalar_lea.vmem %s163_s25, 128  ;;  %p272_p11 = scmp.lt.s32.totalorder %s163_s25, %s163_s25 }
  0x1e   :  { %v172_v10 = vld [vmem:[%s334_s2] ss:$0 sm:$0xff]  ;;  %p268_p10 = scmp.ne.s32.totalorder %s163_s25, %s267_s26  ;;  %p273_p12 = scmp.lt.s32.totalorder %s267_s26, %s267_s26 }
  0x20   :  { %193 = vmatpush3.bf16.msra.mxu0 %v218_v2  ;;  %p274_p13 = por %p273_p12, %p272_p11 }
  0x21   :  { %194 = vmatprep.subr.bf16.mxu0 %v297_v0 }
  0x22   :  { %p275_p0 = pnand %p274_p13, %p268_p10 }
  0x24   :  { %195 = vmatpush3.bf16.msra.mxu0 %v219_v3 }
  0x25   :  { %196 = vmatprep.subr.bf16.mxu0 %v297_v0 }
  0x28   :  { %197 = vmatpush3.bf16.msra.mxu0 %v220_v4 }
  0x29   :  { %198 = vmatprep.subr.bf16.mxu0 %v297_v0 }
  0x2c   :  { %199 = vmatpush3.bf16.msra.mxu0 %v221_v5 }
  0x2d   :  { %200 = vmatprep.subr.bf16.mxu0 %v297_v0 }
  0x30   :  { %201 = vmatpush3.bf16.msra.mxu0 %v222_v6 }
  0x31   :  { %202 = vmatprep.subr.bf16.mxu0 %v297_v0 }
  0x34   :  { %203 = vmatpush3.bf16.msra.mxu0 %v223_v7 }
  0x35   :  { %204 = vmatprep.subr.bf16.mxu0 %v297_v0 }
  0x38   :  { %205 = vmatpush3.bf16.msra.mxu0 %v224_v8 }
  0x3b   :  { %207 = vmatmul.mubr.bf16.vlgmr.msra.gmra.mxu0 %v42_v9 }
  0xfb   :  { %v148_v11 = vpop.f32.mrf.mxu0 }
  0xfc   :  { %v149_v12 = vadd.f32 %v172_v10, %v148_v11 }
  0xfd   :  { %v208_v13 = vpop.f32.mrf.mxu0 }
  0xfe   :  { %225 = vtanh.f32 %v149_v12 }
  0xff   :  { %v151_v14 = vpop.f32.mrf.mxu0 }
 0x101   :  { %v209_v15 = vpop.f32.mrf.mxu0 }
 0x10b   :  { %v226_v16 = vpop.eup %225 }
 0x10c   :  { %155 = vst [vmem:[#allocation7] sm:$0xff] %v226_v16 }
 0x10d   :  { %278 = shalt.err (!%p275_p0)
}
 0x10e   :  { %165 = dma.vmem_to_hbm [thread:$0]  %s163_s25, 128, %s335_s3, [#allocation4]  }
 0x10f   :  { %291 = dma.done.wait [#allocation4], 128  }
 0x110   :  { %292 = vsyncadd [#allocation4], 4294967168 }
 0x111   :  { %169 = vsyncpa [#allocation3], 1 }
 0x112   :  { %170 = vsyncpa [#allocation6], 1 }
 0x113   :  { %171 = vsyncpa [#allocation4], 1 }

</bundles_post_ra>
